<compile_context>
chip_gen: v5e
topology: v5e:2x2
jax: 0.10.0
libtpu: 0.0.40
codegen_flags: <defaults>
</compile_context>

<pallas_src>
import jax
import jax.numpy as jnp
from jax.experimental import pallas as pl
from jax.experimental.pallas import tpu as pltpu


def _affine(w, b, x):
    """w: (out, in), b: (out, 1), x: (in, T) -> (out, T).

    Unrolled broadcast-multiply-accumulate over the tiny contraction dim
    (pure VPU work, no MXU fill/drain on the critical path).
    """
    out_dim, in_dim = w.shape
    acc = w[:, 0:1] * x[0:1, :]
    for k in range(1, in_dim):
        acc = acc + w[:, k:k + 1] * x[k:k + 1, :]
    return acc + b


def mlp_kernel(x_ref, w1_ref, b1_ref, w2_ref, b2_ref, w3_ref, b3_ref, o_ref):
    x = x_ref[...]                       # (2, T)  batch on lanes
    h1 = jnp.maximum(_affine(w1_ref[...], b1_ref[...], x), 0.0)   # (10, T)
    h2 = jnp.maximum(_affine(w2_ref[...], b2_ref[...], h1), 0.0)  # (10, T)
    o_ref[...] = _affine(w3_ref[...], b3_ref[...], h2)            # (1, T)


def mlp_forward(x, params, *, tile_n=512):
    """x: (N, 2) float32 -> (N, 1) float32."""
    w1, b1, w2, b2, w3, b3 = params      # torch layout: w (out, in), b (out,)
    n = x.shape[0]
    n_pad = pl.cdiv(n, tile_n) * tile_n

    # Wrapper-side layout plumbing: batch on lanes, zero-pad to the tile size.
    xt = jnp.zeros((2, n_pad), jnp.float32).at[:, :n].set(x.T)
    b1c = b1.reshape(-1, 1)
    b2c = b2.reshape(-1, 1)
    b3c = b3.reshape(-1, 1)

    grid = (n_pad // tile_n,)
    out = pl.pallas_call(
        mlp_kernel,
        out_shape=jax.ShapeDtypeStruct((1, n_pad), jnp.float32),
        grid=grid,
        in_specs=[
            pl.BlockSpec((2, tile_n), lambda i: (0, i)),      # x tile (streamed)
            pl.BlockSpec(w1.shape, lambda i: (0, 0)),         # weights: resident
            pl.BlockSpec(b1c.shape, lambda i: (0, 0)),
            pl.BlockSpec(w2.shape, lambda i: (0, 0)),
            pl.BlockSpec(b2c.shape, lambda i: (0, 0)),
            pl.BlockSpec(w3.shape, lambda i: (0, 0)),
            pl.BlockSpec(b3c.shape, lambda i: (0, 0)),
        ],
        out_specs=pl.BlockSpec((1, tile_n), lambda i: (0, i)),  # lane-dense store
        compiler_params=pltpu.CompilerParams(
            dimension_semantics=("parallel",),
        ),
    )(xt, w1, b1c, w2, b2c, w3, b3c)

    # Back to the module's (N, 1) output shape.
    return out[:, :n].T


def init_params(key):
    """Deterministic init, PyTorch nn.Linear layout: w (out, in), b (out,)."""
    def linear(key, fan_in, fan_out):
        kw, kb = jax.random.split(key)
        bound = 1.0 / jnp.sqrt(float(fan_in))
        w = jax.random.uniform(kw, (fan_out, fan_in), jnp.float32, -bound, bound)
        b = jax.random.uniform(kb, (fan_out,), jnp.float32, -bound, bound)
        return w, b

    k1, k2, k3 = jax.random.split(key, 3)
    w1, b1 = linear(k1, 2, 10)
    w2, b2 = linear(k2, 10, 10)
    w3, b3 = linear(k3, 10, 1)
    return (w1, b1, w2, b2, w3, b3)


def mlp_reference(x, params):
    w1, b1, w2, b2, w3, b3 = params
    h1 = jnp.maximum(x @ w1.T + b1, 0.0)
    h2 = jnp.maximum(h1 @ w2.T + b2, 0.0)
    return h2 @ w3.T + b3


if __name__ == "__main__":
    key = jax.random.PRNGKey(0)
    kx, kx2, kp = jax.random.split(key, 3)
    params = init_params(kp)

    # Small case matching the module's forward: (batch, 2) similarity features.
    N = 8
    x = jax.random.normal(kx, (N, 2), dtype=jnp.float32)
    out = jax.block_until_ready(mlp_forward(x, params))
    ref = mlp_reference(x, params)
    assert out.shape == (N, 1), out.shape
    assert jnp.allclose(out, ref, atol=1e-5, rtol=1e-5), "mismatch vs reference (N=8)"

    # Larger case: exercises multiple grid steps + tail padding.
    N2 = 1000
    x2 = jax.random.normal(kx2, (N2, 2), dtype=jnp.float32)
    out2 = jax.block_until_ready(mlp_forward(x2, params))
    ref2 = mlp_reference(x2, params)
    assert out2.shape == (N2, 1), out2.shape
    assert jnp.allclose(out2, ref2, atol=1e-5, rtol=1e-5), "mismatch vs reference (N=1000)"

    print("KERNEL_OK")
</pallas_src>

<mosaic_0001>
module attributes {stable_mosaic.version = 11 : i64} {
  func.func @mlp_kernel(%arg0: i32, %arg1: memref<2x512xf32, #tpu.memory_space<vmem>>, %arg2: memref<10x2xf32, #tpu.memory_space<vmem>>, %arg3: memref<10x1xf32, #tpu.memory_space<vmem>>, %arg4: memref<10x10xf32, #tpu.memory_space<vmem>>, %arg5: memref<10x1xf32, #tpu.memory_space<vmem>>, %arg6: memref<1x10xf32, #tpu.memory_space<vmem>>, %arg7: memref<1x1xf32, #tpu.memory_space<vmem>>, %arg8: memref<1x512xf32, #tpu.memory_space<vmem>>) attributes {dimension_semantics = [#tpu.dimension_semantics<parallel>], iteration_bounds = array<i64: 1>, scalar_prefetch = 0 : i64, scratch_operands = 0 : i64, tpu.core_type = #tpu.core_type<tc>, window_params = [{transform_indices = @transform_0, window_bounds = array<i64: 2, 512>}, {pipeline_mode = #tpu.pipeline_mode<synchronous>, transform_indices = @transform_1, window_bounds = array<i64: 10, 2>}, {pipeline_mode = #tpu.pipeline_mode<synchronous>, transform_indices = @transform_2, window_bounds = array<i64: 10, 1>}, {pipeline_mode = #tpu.pipeline_mode<synchronous>, transform_indices = @transform_3, window_bounds = array<i64: 10, 10>}, {pipeline_mode = #tpu.pipeline_mode<synchronous>, transform_indices = @transform_4, window_bounds = array<i64: 10, 1>}, {pipeline_mode = #tpu.pipeline_mode<synchronous>, transform_indices = @transform_5, window_bounds = array<i64: 1, 10>}, {pipeline_mode = #tpu.pipeline_mode<synchronous>, transform_indices = @transform_6, window_bounds = array<i64: 1, 1>}, {transform_indices = @transform_7, window_bounds = array<i64: 1, 512>}]} {
    %c0 = arith.constant 0 : index
    %c0_0 = arith.constant 0 : index
    %0 = vector.load %arg1[%c0, %c0_0] : memref<2x512xf32, #tpu.memory_space<vmem>>, vector<2x512xf32>
    %c0_1 = arith.constant 0 : index
    %c0_2 = arith.constant 0 : index
    %1 = vector.load %arg2[%c0_1, %c0_2] : memref<10x2xf32, #tpu.memory_space<vmem>>, vector<10x2xf32>
    %c0_3 = arith.constant 0 : index
    %c0_4 = arith.constant 0 : index
    %2 = vector.load %arg3[%c0_3, %c0_4] : memref<10x1xf32, #tpu.memory_space<vmem>>, vector<10x1xf32>
    %3 = vector.extract_strided_slice %1 {offsets = [0, 0], sizes = [10, 1], strides = [1, 1]} : vector<10x2xf32> to vector<10x1xf32>
    %4 = vector.extract_strided_slice %0 {offsets = [0, 0], sizes = [1, 512], strides = [1, 1]} : vector<2x512xf32> to vector<1x512xf32>
    %5 = vector.broadcast %3 : vector<10x1xf32> to vector<10x512xf32>
    %6 = vector.broadcast %4 : vector<1x512xf32> to vector<10x512xf32>
    %7 = arith.mulf %5, %6 : vector<10x512xf32>
    %8 = vector.extract_strided_slice %1 {offsets = [0, 1], sizes = [10, 1], strides = [1, 1]} : vector<10x2xf32> to vector<10x1xf32>
    %9 = vector.extract_strided_slice %0 {offsets = [1, 0], sizes = [1, 512], strides = [1, 1]} : vector<2x512xf32> to vector<1x512xf32>
    %10 = vector.broadcast %8 : vector<10x1xf32> to vector<10x512xf32>
    %11 = vector.broadcast %9 : vector<1x512xf32> to vector<10x512xf32>
    %12 = arith.mulf %10, %11 : vector<10x512xf32>
    %13 = arith.addf %7, %12 : vector<10x512xf32>
    %14 = vector.broadcast %2 : vector<10x1xf32> to vector<10x512xf32>
    %15 = arith.addf %13, %14 : vector<10x512xf32>
    %cst = arith.constant 0.000000e+00 : f32
    %16 = vector.broadcast %cst : f32 to vector<10x512xf32>
    %17 = arith.maximumf %15, %16 : vector<10x512xf32>
    %c0_5 = arith.constant 0 : index
    %c0_6 = arith.constant 0 : index
    %18 = vector.load %arg4[%c0_5, %c0_6] : memref<10x10xf32, #tpu.memory_space<vmem>>, vector<10x10xf32>
    %c0_7 = arith.constant 0 : index
    %c0_8 = arith.constant 0 : index
    %19 = vector.load %arg5[%c0_7, %c0_8] : memref<10x1xf32, #tpu.memory_space<vmem>>, vector<10x1xf32>
    %20 = vector.extract_strided_slice %18 {offsets = [0, 0], sizes = [10, 1], strides = [1, 1]} : vector<10x10xf32> to vector<10x1xf32>
    %21 = vector.extract_strided_slice %17 {offsets = [0, 0], sizes = [1, 512], strides = [1, 1]} : vector<10x512xf32> to vector<1x512xf32>
    %22 = vector.broadcast %20 : vector<10x1xf32> to vector<10x512xf32>
    %23 = vector.broadcast %21 : vector<1x512xf32> to vector<10x512xf32>
    %24 = arith.mulf %22, %23 : vector<10x512xf32>
    %25 = vector.extract_strided_slice %18 {offsets = [0, 1], sizes = [10, 1], strides = [1, 1]} : vector<10x10xf32> to vector<10x1xf32>
    %26 = vector.extract_strided_slice %17 {offsets = [1, 0], sizes = [1, 512], strides = [1, 1]} : vector<10x512xf32> to vector<1x512xf32>
    %27 = vector.broadcast %25 : vector<10x1xf32> to vector<10x512xf32>
    %28 = vector.broadcast %26 : vector<1x512xf32> to vector<10x512xf32>
    %29 = arith.mulf %27, %28 : vector<10x512xf32>
    %30 = arith.addf %24, %29 : vector<10x512xf32>
    %31 = vector.extract_strided_slice %18 {offsets = [0, 2], sizes = [10, 1], strides = [1, 1]} : vector<10x10xf32> to vector<10x1xf32>
    %32 = vector.extract_strided_slice %17 {offsets = [2, 0], sizes = [1, 512], strides = [1, 1]} : vector<10x512xf32> to vector<1x512xf32>
    %33 = vector.broadcast %31 : vector<10x1xf32> to vector<10x512xf32>
    %34 = vector.broadcast %32 : vector<1x512xf32> to vector<10x512xf32>
    %35 = arith.mulf %33, %34 : vector<10x512xf32>
    %36 = arith.addf %30, %35 : vector<10x512xf32>
    %37 = vector.extract_strided_slice %18 {offsets = [0, 3], sizes = [10, 1], strides = [1, 1]} : vector<10x10xf32> to vector<10x1xf32>
    %38 = vector.extract_strided_slice %17 {offsets = [3, 0], sizes = [1, 512], strides = [1, 1]} : vector<10x512xf32> to vector<1x512xf32>
    %39 = vector.broadcast %37 : vector<10x1xf32> to vector<10x512xf32>
    %40 = vector.broadcast %38 : vector<1x512xf32> to vector<10x512xf32>
    %41 = arith.mulf %39, %40 : vector<10x512xf32>
    %42 = arith.addf %36, %41 : vector<10x512xf32>
    %43 = vector.extract_strided_slice %18 {offsets = [0, 4], sizes = [10, 1], strides = [1, 1]} : vector<10x10xf32> to vector<10x1xf32>
    %44 = vector.extract_strided_slice %17 {offsets = [4, 0], sizes = [1, 512], strides = [1, 1]} : vector<10x512xf32> to vector<1x512xf32>
    %45 = vector.broadcast %43 : vector<10x1xf32> to vector<10x512xf32>
    %46 = vector.broadcast %44 : vector<1x512xf32> to vector<10x512xf32>
    %47 = arith.mulf %45, %46 : vector<10x512xf32>
    %48 = arith.addf %42, %47 : vector<10x512xf32>
    %49 = vector.extract_strided_slice %18 {offsets = [0, 5], sizes = [10, 1], strides = [1, 1]} : vector<10x10xf32> to vector<10x1xf32>
    %50 = vector.extract_strided_slice %17 {offsets = [5, 0], sizes = [1, 512], strides = [1, 1]} : vector<10x512xf32> to vector<1x512xf32>
    %51 = vector.broadcast %49 : vector<10x1xf32> to vector<10x512xf32>
    %52 = vector.broadcast %50 : vector<1x512xf32> to vector<10x512xf32>
    %53 = arith.mulf %51, %52 : vector<10x512xf32>
    %54 = arith.addf %48, %53 : vector<10x512xf32>
    %55 = vector.extract_strided_slice %18 {offsets = [0, 6], sizes = [10, 1], strides = [1, 1]} : vector<10x10xf32> to vector<10x1xf32>
    %56 = vector.extract_strided_slice %17 {offsets = [6, 0], sizes = [1, 512], strides = [1, 1]} : vector<10x512xf32> to vector<1x512xf32>
    %57 = vector.broadcast %55 : vector<10x1xf32> to vector<10x512xf32>
    %58 = vector.broadcast %56 : vector<1x512xf32> to vector<10x512xf32>
    %59 = arith.mulf %57, %58 : vector<10x512xf32>
    %60 = arith.addf %54, %59 : vector<10x512xf32>
    %61 = vector.extract_strided_slice %18 {offsets = [0, 7], sizes = [10, 1], strides = [1, 1]} : vector<10x10xf32> to vector<10x1xf32>
    %62 = vector.extract_strided_slice %17 {offsets = [7, 0], sizes = [1, 512], strides = [1, 1]} : vector<10x512xf32> to vector<1x512xf32>
    %63 = vector.broadcast %61 : vector<10x1xf32> to vector<10x512xf32>
    %64 = vector.broadcast %62 : vector<1x512xf32> to vector<10x512xf32>
    %65 = arith.mulf %63, %64 : vector<10x512xf32>
    %66 = arith.addf %60, %65 : vector<10x512xf32>
    %67 = vector.extract_strided_slice %18 {offsets = [0, 8], sizes = [10, 1], strides = [1, 1]} : vector<10x10xf32> to vector<10x1xf32>
    %68 = vector.extract_strided_slice %17 {offsets = [8, 0], sizes = [1, 512], strides = [1, 1]} : vector<10x512xf32> to vector<1x512xf32>
    %69 = vector.broadcast %67 : vector<10x1xf32> to vector<10x512xf32>
    %70 = vector.broadcast %68 : vector<1x512xf32> to vector<10x512xf32>
    %71 = arith.mulf %69, %70 : vector<10x512xf32>
    %72 = arith.addf %66, %71 : vector<10x512xf32>
    %73 = vector.extract_strided_slice %18 {offsets = [0, 9], sizes = [10, 1], strides = [1, 1]} : vector<10x10xf32> to vector<10x1xf32>
    %74 = vector.extract_strided_slice %17 {offsets = [9, 0], sizes = [1, 512], strides = [1, 1]} : vector<10x512xf32> to vector<1x512xf32>
    %75 = vector.broadcast %73 : vector<10x1xf32> to vector<10x512xf32>
    %76 = vector.broadcast %74 : vector<1x512xf32> to vector<10x512xf32>
    %77 = arith.mulf %75, %76 : vector<10x512xf32>
    %78 = arith.addf %72, %77 : vector<10x512xf32>
    %79 = vector.broadcast %19 : vector<10x1xf32> to vector<10x512xf32>
    %80 = arith.addf %78, %79 : vector<10x512xf32>
    %cst_9 = arith.constant 0.000000e+00 : f32
    %81 = vector.broadcast %cst_9 : f32 to vector<10x512xf32>
    %82 = arith.maximumf %80, %81 : vector<10x512xf32>
    %c0_10 = arith.constant 0 : index
    %c0_11 = arith.constant 0 : index
    %83 = vector.load %arg6[%c0_10, %c0_11] : memref<1x10xf32, #tpu.memory_space<vmem>>, vector<1x10xf32>
    %c0_12 = arith.constant 0 : index
    %c0_13 = arith.constant 0 : index
    %84 = vector.load %arg7[%c0_12, %c0_13] : memref<1x1xf32, #tpu.memory_space<vmem>>, vector<1x1xf32>
    %85 = vector.extract_strided_slice %83 {offsets = [0, 0], sizes = [1, 1], strides = [1, 1]} : vector<1x10xf32> to vector<1x1xf32>
    %86 = vector.extract_strided_slice %82 {offsets = [0, 0], sizes = [1, 512], strides = [1, 1]} : vector<10x512xf32> to vector<1x512xf32>
    %87 = vector.broadcast %85 : vector<1x1xf32> to vector<1x512xf32>
    %88 = arith.mulf %87, %86 : vector<1x512xf32>
    %89 = vector.extract_strided_slice %83 {offsets = [0, 1], sizes = [1, 1], strides = [1, 1]} : vector<1x10xf32> to vector<1x1xf32>
    %90 = vector.extract_strided_slice %82 {offsets = [1, 0], sizes = [1, 512], strides = [1, 1]} : vector<10x512xf32> to vector<1x512xf32>
    %91 = vector.broadcast %89 : vector<1x1xf32> to vector<1x512xf32>
    %92 = arith.mulf %91, %90 : vector<1x512xf32>
    %93 = arith.addf %88, %92 : vector<1x512xf32>
    %94 = vector.extract_strided_slice %83 {offsets = [0, 2], sizes = [1, 1], strides = [1, 1]} : vector<1x10xf32> to vector<1x1xf32>
    %95 = vector.extract_strided_slice %82 {offsets = [2, 0], sizes = [1, 512], strides = [1, 1]} : vector<10x512xf32> to vector<1x512xf32>
    %96 = vector.broadcast %94 : vector<1x1xf32> to vector<1x512xf32>
    %97 = arith.mulf %96, %95 : vector<1x512xf32>
    %98 = arith.addf %93, %97 : vector<1x512xf32>
    %99 = vector.extract_strided_slice %83 {offsets = [0, 3], sizes = [1, 1], strides = [1, 1]} : vector<1x10xf32> to vector<1x1xf32>
    %100 = vector.extract_strided_slice %82 {offsets = [3, 0], sizes = [1, 512], strides = [1, 1]} : vector<10x512xf32> to vector<1x512xf32>
    %101 = vector.broadcast %99 : vector<1x1xf32> to vector<1x512xf32>
    %102 = arith.mulf %101, %100 : vector<1x512xf32>
    %103 = arith.addf %98, %102 : vector<1x512xf32>
    %104 = vector.extract_strided_slice %83 {offsets = [0, 4], sizes = [1, 1], strides = [1, 1]} : vector<1x10xf32> to vector<1x1xf32>
    %105 = vector.extract_strided_slice %82 {offsets = [4, 0], sizes = [1, 512], strides = [1, 1]} : vector<10x512xf32> to vector<1x512xf32>
    %106 = vector.broadcast %104 : vector<1x1xf32> to vector<1x512xf32>
    %107 = arith.mulf %106, %105 : vector<1x512xf32>
    %108 = arith.addf %103, %107 : vector<1x512xf32>
    %109 = vector.extract_strided_slice %83 {offsets = [0, 5], sizes = [1, 1], strides = [1, 1]} : vector<1x10xf32> to vector<1x1xf32>
    %110 = vector.extract_strided_slice %82 {offsets = [5, 0], sizes = [1, 512], strides = [1, 1]} : vector<10x512xf32> to vector<1x512xf32>
    %111 = vector.broadcast %109 : vector<1x1xf32> to vector<1x512xf32>
    %112 = arith.mulf %111, %110 : vector<1x512xf32>
    %113 = arith.addf %108, %112 : vector<1x512xf32>
    %114 = vector.extract_strided_slice %83 {offsets = [0, 6], sizes = [1, 1], strides = [1, 1]} : vector<1x10xf32> to vector<1x1xf32>
    %115 = vector.extract_strided_slice %82 {offsets = [6, 0], sizes = [1, 512], strides = [1, 1]} : vector<10x512xf32> to vector<1x512xf32>
    %116 = vector.broadcast %114 : vector<1x1xf32> to vector<1x512xf32>
    %117 = arith.mulf %116, %115 : vector<1x512xf32>
    %118 = arith.addf %113, %117 : vector<1x512xf32>
    %119 = vector.extract_strided_slice %83 {offsets = [0, 7], sizes = [1, 1], strides = [1, 1]} : vector<1x10xf32> to vector<1x1xf32>
    %120 = vector.extract_strided_slice %82 {offsets = [7, 0], sizes = [1, 512], strides = [1, 1]} : vector<10x512xf32> to vector<1x512xf32>
    %121 = vector.broadcast %119 : vector<1x1xf32> to vector<1x512xf32>
    %122 = arith.mulf %121, %120 : vector<1x512xf32>
    %123 = arith.addf %118, %122 : vector<1x512xf32>
    %124 = vector.extract_strided_slice %83 {offsets = [0, 8], sizes = [1, 1], strides = [1, 1]} : vector<1x10xf32> to vector<1x1xf32>
    %125 = vector.extract_strided_slice %82 {offsets = [8, 0], sizes = [1, 512], strides = [1, 1]} : vector<10x512xf32> to vector<1x512xf32>
    %126 = vector.broadcast %124 : vector<1x1xf32> to vector<1x512xf32>
    %127 = arith.mulf %126, %125 : vector<1x512xf32>
    %128 = arith.addf %123, %127 : vector<1x512xf32>
    %129 = vector.extract_strided_slice %83 {offsets = [0, 9], sizes = [1, 1], strides = [1, 1]} : vector<1x10xf32> to vector<1x1xf32>
    %130 = vector.extract_strided_slice %82 {offsets = [9, 0], sizes = [1, 512], strides = [1, 1]} : vector<10x512xf32> to vector<1x512xf32>
    %131 = vector.broadcast %129 : vector<1x1xf32> to vector<1x512xf32>
    %132 = arith.mulf %131, %130 : vector<1x512xf32>
    %133 = arith.addf %128, %132 : vector<1x512xf32>
    %134 = vector.broadcast %84 : vector<1x1xf32> to vector<1x512xf32>
    %135 = arith.addf %133, %134 : vector<1x512xf32>
    %c0_14 = arith.constant 0 : index
    %c0_15 = arith.constant 0 : index
    %136 = vector.load %arg8[%c0_14, %c0_15] : memref<1x512xf32, #tpu.memory_space<vmem>>, vector<1x512xf32>
    tpu.vector_store %arg8[%c0_14, %c0_15], %135 {strides = array<i32>} : memref<1x512xf32, #tpu.memory_space<vmem>>, vector<1x512xf32>,
    return
  }
  func.func @transform_0(%arg0: i32) -> (i32, i32) {
    %c0_i32 = arith.constant 0 : i32
    %c0_i32_0 = arith.constant 0 : i32
    return %c0_i32, %arg0 : i32, i32
  }
  func.func @transform_1(%arg0: i32) -> (i32, i32) {
    %c0_i32 = arith.constant 0 : i32
    %c0_i32_0 = arith.constant 0 : i32
    %c0_i32_1 = arith.constant 0 : i32
    return %c0_i32, %c0_i32_0 : i32, i32
  }
  func.func @transform_2(%arg0: i32) -> (i32, i32) {
    %c0_i32 = arith.constant 0 : i32
    %c0_i32_0 = arith.constant 0 : i32
    %c0_i32_1 = arith.constant 0 : i32
    return %c0_i32, %c0_i32_0 : i32, i32
  }
  func.func @transform_3(%arg0: i32) -> (i32, i32) {
    %c0_i32 = arith.constant 0 : i32
    %c0_i32_0 = arith.constant 0 : i32
    %c0_i32_1 = arith.constant 0 : i32
    return %c0_i32, %c0_i32_0 : i32, i32
  }
  func.func @transform_4(%arg0: i32) -> (i32, i32) {
    %c0_i32 = arith.constant 0 : i32
    %c0_i32_0 = arith.constant 0 : i32
    %c0_i32_1 = arith.constant 0 : i32
    return %c0_i32, %c0_i32_0 : i32, i32
  }
  func.func @transform_5(%arg0: i32) -> (i32, i32) {
    %c0_i32 = arith.constant 0 : i32
    %c0_i32_0 = arith.constant 0 : i32
    %c0_i32_1 = arith.constant 0 : i32
    return %c0_i32, %c0_i32_0 : i32, i32
  }
  func.func @transform_6(%arg0: i32) -> (i32, i32) {
    %c0_i32 = arith.constant 0 : i32
    %c0_i32_0 = arith.constant 0 : i32
    %c0_i32_1 = arith.constant 0 : i32
    return %c0_i32, %c0_i32_0 : i32, i32
  }
  func.func @transform_7(%arg0: i32) -> (i32, i32) {
    %c0_i32 = arith.constant 0 : i32
    %c0_i32_0 = arith.constant 0 : i32
    return %c0_i32, %arg0 : i32, i32
  }
}

</mosaic_0001>

<bundles_post_ra>
// kernel: tpu_custom_call.1
= control target key start
LH: loop header
LB: loop body
LE: loop exit
PB: predicated region body
PF: predicated region fallthrough
CT: control target
= control target key end

     0   :  { %s1245_s0 = inlined_call_operand.vmem [shape: f32[2,512], index: 0, kind: input, shape index: {}]   ;;  %s1246_s1 = inlined_call_operand.vmem [shape: f32[10,2], index: 1, kind: input, shape index: {}]   ;;  %s1247_s2 = inlined_call_operand.vmem [shape: f32[10,1], index: 2, kind: input, shape index: {}]   ;;  %s1248_s3 = inlined_call_operand.vmem [shape: f32[10,10], index: 3, kind: input, shape index: {}]   ;;  %s1249_s4 = inlined_call_operand.vmem [shape: f32[10,1], index: 4, kind: input, shape index: {}]   ;;  %s1250_s5 = inlined_call_operand.vmem [shape: f32[1,10], index: 5, kind: input, shape index: {}]   ;;  %s1251_s6 = inlined_call_operand.<no memory space> [shape: f32[1,1], index: 6, kind: input, shape index: {}]   ;;  %s1252_s7 = inlined_call_operand.hbm [shape: f32[1,512], index: 7, kind: output, shape index: {}]  }
   0x1   :  { %v12_v0 = vstv %s1251_s6 }
   0x2   :  { %13 = vst [vmem:[#allocation2] sm:$0x1] %v12_v0 }
   0x3   :  { %v829_v1 = vld [vmem:[%s1248_s3 + $0x8] sm:$0x3]  ;;  %v32_v2 = vld [vmem:[%s1247_s2] sm:$0xff]  ;;  %v772_v4 = vmov 1   ;;  %v773_v5 = vmov 0  }
   0x4   :  { %v30_v3 = vld [vmem:[%s1246_s1] sm:$0xff]  ;;  %716 = vset.pattern.permute.xlu0 %v772_v4  ;;  %712 = vset.pattern.permute.xlu1 %v772_v4 }
   0x5   :  { %713 = vset.pattern.permute.xlu2 %v773_v5  ;;  %158 = vperm.xlu0 %716, %v829_v1  }
   0x6   :  { %14 = vsyncpa [#allocation4], 0  ;;  %103 = vperm.xlu2 %713, %v32_v2   ;;  %66 = vperm.xlu1 %712, %v30_v3   ;;  %v33_v6 = vld [vmem:[%s1247_s2 + $0x8] sm:$0x3]  ;;  %v127_v8 = vld [vmem:[%s1248_s3] sm:$0xff]  ;;  %v774_v9 = vmov 4  }
   0x7   :  { %v31_v7 = vld [vmem:[%s1246_s1 + $0x8] sm:$0x3]  ;;  %v775_v10 = vmov 9   ;;  %v776_v11 = vmov 2   ;;  %v777_v12 = vmov 3   ;;  %v778_v13 = vmov 5  }
   0x8   :  { %v431_v14 = vld [vmem:[%s1250_s5] sm:$0x1]  ;;  %v779_v15 = vmov 6   ;;  %v780_v16 = vmov 7   ;;  %v781_v17 = vmov 8   ;;  %vm673_vm0 = vcmask 1040384  }
   0x9   :  { %v129_v18 = vld [vmem:[%s1249_s4] sm:$0xff]  ;;  %v130_v19 = vld [vmem:[%s1249_s4 + $0x8] sm:$0x3]  ;;  %vm675_vm1 = vcmask 1042434   ;;  %vm677_vm2 = vcmask 1041408   ;;  %s692_s20 = sshll.u32 %s1252_s7, 4  ;;  %s693_s20 = int_to_ptr.hbm [resolvable:$true] %s692_s20 }
   0xa   :  { %v29_v28 = vld [vmem:[%s1245_s0] sm:$0xff]  ;;  %s782_s0 = smov [#allocation3]  }
   0xb   :  { %v432_v29 = vld [vmem:[#allocation2] sm:$0x1]  ;;  %v73_v33 = vperm.slane %v29_v28, 1  ;;  %v74_v34 = vperm.slane %v29_v28, 3  ;;  %v75_v35 = vperm.slane %v29_v28, 5  ;;  %v76_v36 = vperm.slane %v29_v28, 7 }
   0xc   :  { %v45_v37 = vperm.slane %v29_v28, 0  ;;  %v46_v38 = vperm.slane %v29_v28, 2  ;;  %v47_v39 = vperm.slane %v29_v28, 4  ;;  %v48_v40 = vperm.slane %v29_v28, 6  ;;  %s690_s17 = sshll.u32 %s782_s0, 4  ;;  %s691_s17 = int_to_ptr.vmem [resolvable:$true] %s690_s17 }
   0xd   :  { %721 = vset.pattern.permute.xlu0 %v774_v9  ;;  %v81_v41 = vperm.slane %v73_v33, 1  ;;  %v82_v42 = vperm.slane %v74_v34, 1  ;;  %v83_v43 = vperm.slane %v75_v35, 1  ;;  %v84_v44 = vperm.slane %v76_v36, 1 }
   0xe   :  { %108 = vperm.xlu2 %713, %v33_v6   ;;  %70 = vperm.xlu1 %712, %v31_v7   ;;  %v53_v45 = vperm.slane %v45_v37, 0  ;;  %v54_v46 = vperm.slane %v46_v38, 0  ;;  %v55_v47 = vperm.slane %v47_v39, 0  ;;  %v56_v48 = vperm.slane %v48_v40, 0 }
   0xf   :  { %238 = vperm.xlu0 %721, %v127_v8  }
  0x16   :  { %715 = vset.pattern.permute.xlu2 %v772_v4  ;;  %714 = vset.pattern.permute.xlu1 %v773_v5 }
  0x17   :  { %730 = vset.pattern.permute.xlu0 %v775_v10  ;;  %154 = vperm.xlu2 %715, %v127_v8  }
  0x18   :  { %138 = vperm.xlu1 %714, %v829_v1   ;;  %378 = vperm.xlu0 %730, %v127_v8  }
  0x1f   :  { %718 = vset.pattern.permute.xlu2 %v776_v11 }
  0x20   :  { %717 = vset.pattern.permute.xlu1 %v776_v11  ;;  %731 = vset.pattern.permute.xlu0 %v773_v5 }
  0x21   :  { %186 = vperm.xlu2 %718, %v829_v1   ;;  %182 = vperm.xlu1 %717, %v127_v8  }
  0x22   :  { %36 = vperm.xlu0 %731, %v30_v3  }
  0x29   :  { %720 = vset.pattern.permute.xlu2 %v777_v12  ;;  %719 = vset.pattern.permute.xlu1 %v777_v12 }
  0x2a   :  { %214 = vperm.xlu2 %720, %v829_v1   ;;  %41 = vperm.xlu0 %731, %v31_v7  }
  0x2b   :  { %210 = vperm.xlu1 %719, %v127_v8  }
  0x32   :  { %723 = vset.pattern.permute.xlu2 %v778_v13  ;;  %133 = vperm.xlu0 %731, %v127_v8  }
  0x33   :  { %722 = vset.pattern.permute.xlu1 %v774_v9  ;;  %266 = vperm.xlu2 %723, %v127_v8  }
  0x34   :  { %242 = vperm.xlu1 %722, %v829_v1  }
  0x3a   :  { %435 = vperm.xlu0 %731, %v431_v14  }
  0x3b   :  { %725 = vset.pattern.permute.xlu2 %v779_v15 }
  0x3c   :  { %724 = vset.pattern.permute.xlu1 %v778_v13  ;;  %294 = vperm.xlu2 %725, %v127_v8  }
  0x3d   :  { %270 = vperm.xlu1 %724, %v829_v1  }
  0x42   :  { %736 = vset.pattern.permute.xlu0 %v779_v15 }
  0x43   :  { %298 = vperm.xlu0 %736, %v829_v1  }
  0x44   :  { %727 = vset.pattern.permute.xlu2 %v780_v16 }
  0x45   :  { %726 = vset.pattern.permute.xlu1 %v780_v16  ;;  %326 = vperm.xlu2 %727, %v829_v1  }
  0x46   :  { %322 = vperm.xlu1 %726, %v127_v8  }
  0x4b   :  { %569 = vperm.xlu0 %736, %v431_v14  }
  0x4d   :  { %729 = vset.pattern.permute.xlu2 %v781_v17 }
  0x4e   :  { %728 = vset.pattern.permute.xlu1 %v781_v17  ;;  %354 = vperm.xlu2 %729, %v829_v1  }
  0x4f   :  { %350 = vperm.xlu1 %728, %v127_v8  }
  0x53   :  { %745 = vset.pattern.permute.xlu0 %v773_v5 }
  0x56   :  { %733 = vset.pattern.permute.xlu2 %v773_v5 }
  0x57   :  { %732 = vset.pattern.permute.xlu1 %v775_v10  ;;  %407 = vperm.xlu2 %733, %v129_v18  }
  0x58   :  { %382 = vperm.xlu1 %732, %v829_v1  }
  0x5f   :  { %735 = vset.pattern.permute.xlu2 %v772_v4 }
  0x60   :  { %734 = vset.pattern.permute.xlu1 %v773_v5  ;;  %444 = vperm.xlu2 %735, %v431_v14   ;;  %v879_v20 = vpop.permute.xlu2 %103 }
  0x61   :  { %412 = vperm.xlu1 %734, %v130_v19  }
  0x68   :  { %738 = vset.pattern.permute.xlu2 %v777_v12  ;;  %v881_v21 = vpop.permute.xlu2 %108 }
  0x69   :  { %737 = vset.pattern.permute.xlu1 %v776_v11  ;;  %494 = vperm.xlu2 %738, %v431_v14  }
  0x6a   :  { %469 = vperm.xlu1 %737, %v431_v14  }
  0x71   :  { %740 = vset.pattern.permute.xlu2 %v778_v13  ;;  %v884_v22 = vpop.permute.xlu2 %154 }
  0x72   :  { %739 = vset.pattern.permute.xlu1 %v774_v9  ;;  %544 = vperm.xlu2 %740, %v431_v14  }
  0x73   :  { %519 = vperm.xlu1 %739, %v431_v14  }
  0x77   :  { %v886_v23 = vpop.permute.xlu0 %158 }
  0x78   :  { %v67_v24 = vpop.permute.xlu1 %66 }
  0x79   :  { %v85_v50 = vmul.f32 %v81_v41, %v67_v24  ;;  %v86_v51 = vmul.f32 %v82_v42, %v67_v24  ;;  %v87_v52 = vmul.f32 %v83_v43, %v67_v24  ;;  %v88_v53 = vmul.f32 %v84_v44, %v67_v24 }
  0x7a   :  { %742 = vset.pattern.permute.xlu2 %v781_v17 }
  0x7b   :  { %741 = vset.pattern.permute.xlu1 %v780_v16  ;;  %619 = vperm.xlu2 %742, %v431_v14   ;;  %v888_v26 = vpop.permute.xlu2 %186 }
  0x7c   :  { %594 = vperm.xlu1 %741, %v431_v14  }
  0x80   :  { %v71_v25 = vpop.permute.xlu1 %70 }
  0x81   :  { %v890_v27 = vpop.permute.xlu0 %238  ;;  %v89_v9 = vmul.f32 %v81_v41, %v71_v25  ;;  %v91_v11 = vmul.f32 %v83_v43, %v71_v25  ;;  %v92_v12 = vmul.f32 %v84_v44, %v71_v25 }
  0x83   :  { %744 = vset.pattern.permute.xlu2 %v773_v5 }
  0x84   :  { %743 = vset.pattern.permute.xlu1 %v775_v10  ;;  %658 = vperm.xlu2 %744, %v432_v29   ;;  %v901_v32 = vpop.permute.xlu2 %214  ;;  %v90_v10 = vmul.f32 %v82_v42, %v71_v25 }
  0x85   :  { %632 = vperm.xlu1 %743, %v431_v14  }
  0x8a   :  { %v897_v30 = vpop.permute.xlu1 %138  ;;  %v899_v31 = vpop.permute.xlu0 %378 }
  0x8d   :  { %v905_v55 = vpop.permute.xlu2 %266 }
  0x93   :  { %v903_v49 = vpop.permute.xlu1 %182 }
  0x94   :  { %v37_v54 = vpop.permute.xlu0 %36 }
  0x95   :  { %v57_v56 = vmul.f32 %v53_v45, %v37_v54  ;;  %v58_v57 = vmul.f32 %v54_v46, %v37_v54  ;;  %v59_v58 = vmul.f32 %v55_v47, %v37_v54  ;;  %v60_v59 = vmul.f32 %v56_v48, %v37_v54 }
  0x96   :  { %v295_v18 = vpop.permute.xlu2 %294 }
  0x97   :  { %v93_v60 = vadd.f32 %v85_v50, %v57_v56  ;;  %v94_v61 = vadd.f32 %v86_v51, %v58_v57  ;;  %v95_v62 = vadd.f32 %v87_v52, %v59_v58  ;;  %v96_v63 = vadd.f32 %v88_v53, %v60_v59 }
  0x99   :  { %v111_v0 = vadd.f32 %v879_v20, %v93_v60  ;;  %v112_v1 = vadd.f32 %v879_v20, %v94_v61  ;;  %v113_v2 = vadd.f32 %v879_v20, %v95_v62  ;;  %v114_v3 = vadd.f32 %v879_v20, %v96_v63 }
  0x9b   :  { %v911_v4 = vmax.f32 %v111_v0, 0.0  ;;  %v913_v5 = vmax.f32 %v112_v1, 0.0  ;;  %v915_v6 = vmax.f32 %v113_v2, 0.0  ;;  %v917_v7 = vmax.f32 %v114_v3, 0.0 }
  0x9c   :  { %v42_v8 = vpop.permute.xlu0 %41 }
  0x9d   :  { %v211_v13 = vpop.permute.xlu1 %210  ;;  %v61_v14 = vmul.f32 %v53_v45, %v42_v8  ;;  %v62_v15 = vmul.f32 %v54_v46, %v42_v8  ;;  %v63_v16 = vmul.f32 %v55_v47, %v42_v8  ;;  %v64_v17 = vmul.f32 %v56_v48, %v42_v8 }
  0x9e   :  { %v1257_v19 = vperm.slane %v911_v4, 6  ;;  %v1256_v20 = vperm.slane %v913_v5, 6  ;;  %v1255_v24 = vperm.slane %v915_v6, 6  ;;  %v1254_v28 = vperm.slane %v917_v7, 6 }
  0x9f   :  { %v97_v29 = vadd.f32 %v89_v9, %v61_v14  ;;  %v98_v33 = vadd.f32 %v90_v10, %v62_v15  ;;  %v99_v34 = vadd.f32 %v91_v11, %v63_v16  ;;  %v100_v35 = vadd.f32 %v92_v12, %v64_v17  ;;  %v1001_v10 = vpop.permute.xlu2 %326 }
  0xa0   :  { %v217_v25 = vperm.slane %v911_v4, 3  ;;  %v218_v36 = vperm.slane %v913_v5, 3  ;;  %v219_v37 = vperm.slane %v915_v6, 3  ;;  %v220_v38 = vperm.slane %v917_v7, 3 }
  0xa1   :  { %v928_v39 = vadd.f32 %v881_v21, %v97_v29  ;;  %v931_v40 = vadd.f32 %v881_v21, %v98_v33  ;;  %v934_v41 = vadd.f32 %v881_v21, %v99_v34  ;;  %v937_v42 = vadd.f32 %v881_v21, %v100_v35 }
  0xa2   :  { %v941_v43 = vmul.f32 %v1257_v19, %v295_v18  ;;  %v945_v44 = vmul.f32 %v1256_v20, %v295_v18  ;;  %v949_v45 = vmul.f32 %v1255_v24, %v295_v18  ;;  %v953_v46 = vmul.f32 %v1254_v28, %v295_v18 }
  0xa3   :  { %v1260_v47 = vmax.f32 %v928_v39, 0.0  ;;  %v1259_v21 = vmax.f32 %v931_v40, 0.0  ;;  %v1258_v48 = vmax.f32 %v934_v41, 0.0  ;;  %v1253_v50 = vmax.f32 %v937_v42, 0.0 }
  0xa4   :  { %v959_v51 = vmul.f32 %v217_v25, %v211_v13  ;;  %v961_v52 = vmul.f32 %v218_v36, %v211_v13  ;;  %v963_v53 = vmul.f32 %v219_v37, %v211_v13  ;;  %v965_v54 = vmul.f32 %v220_v38, %v211_v13  ;;  %v134_v63 = vpop.permute.xlu0 %133 }
  0xa5   :  { %v968_v56 = vmul.f32 %v217_v25, %v901_v32  ;;  %v971_v57 = vmul.f32 %v218_v36, %v901_v32  ;;  %v977_v59 = vperm.slane %v1260_v47, 1  ;;  %v981_v60 = vperm.slane %v1259_v21, 1 }
  0xa6   :  { %v973_v58 = vpop.permute.xlu1 %242  ;;  %v984_v61 = vmul.f32 %v219_v37, %v901_v32  ;;  %v987_v62 = vmul.f32 %v220_v38, %v901_v32  ;;  %v141_v0 = vperm.slane %v911_v4, 0  ;;  %v142_v1 = vperm.slane %v913_v5, 0 }
  0xa7   :  { %1264 = vst [vmem:[#allocation6_spill] sm:$0xff] %v981_v60  ;;  %v143_v2 = vperm.slane %v915_v6, 0  ;;  %v144_v3 = vperm.slane %v917_v7, 0  ;;  %v995_v8 = vperm.slane %v1258_v48, 1  ;;  %v999_v9 = vperm.slane %v1253_v50, 1 }
  0xa8   :  { %v145_v14 = vmul.f32 %v141_v0, %v134_v63  ;;  %v146_v15 = vmul.f32 %v142_v1, %v134_v63  ;;  %v149_v16 = vmul.f32 %v141_v0, %v897_v30  ;;  %v150_v17 = vmul.f32 %v142_v1, %v897_v30 }
  0xa9   :  { %1265 = vst [vmem:[#allocation7_spill] sm:$0xff] %v995_v8  ;;  %v151_v18 = vmul.f32 %v143_v2, %v897_v30  ;;  %v152_v29 = vmul.f32 %v144_v3, %v897_v30  ;;  %v161_v33 = vperm.slane %v911_v4, 1  ;;  %v162_v34 = vperm.slane %v913_v5, 1 }
  0xaa   :  { %1266 = vst [vmem:[#allocation8_spill] sm:$0xff] %v999_v9  ;;  %v163_v35 = vperm.slane %v915_v6, 1  ;;  %v164_v25 = vperm.slane %v917_v7, 1  ;;  %v147_v36 = vmul.f32 %v143_v2, %v134_v63  ;;  %v148_v37 = vmul.f32 %v144_v3, %v134_v63 }
  0xab   :  { %v189_v38 = vperm.slane %v911_v4, 2  ;;  %v190_v0 = vperm.slane %v913_v5, 2  ;;  %v165_v1 = vmul.f32 %v161_v33, %v884_v22  ;;  %v166_v50 = vmul.f32 %v162_v34, %v884_v22 }
  0xac   :  { %v191_v30 = vperm.slane %v915_v6, 2  ;;  %v192_v28 = vperm.slane %v917_v7, 2  ;;  %v169_v24 = vmul.f32 %v161_v33, %v886_v23  ;;  %v170_v20 = vmul.f32 %v162_v34, %v886_v23 }
  0xad   :  { %v171_v19 = vmul.f32 %v163_v35, %v886_v23  ;;  %v172_v63 = vmul.f32 %v164_v25, %v886_v23  ;;  %v167_v3 = vmul.f32 %v163_v35, %v884_v22  ;;  %v168_v48 = vmul.f32 %v164_v25, %v884_v22 }
  0xae   :  { %v173_v21 = vadd.f32 %v165_v1, %v145_v14  ;;  %v174_v47 = vadd.f32 %v166_v50, %v146_v15  ;;  %v177_v13 = vadd.f32 %v169_v24, %v149_v16  ;;  %v178_v12 = vadd.f32 %v170_v20, %v150_v17  ;;  %v1035_v14 = vpop.permute.xlu2 %354  ;;  %v1037_v24 = vpop.permute.xlu0 %435 }
  0xaf   :  { %v1025_v2 = vpop.permute.xlu1 %270  ;;  %v179_v11 = vadd.f32 %v171_v19, %v151_v18  ;;  %v180_v32 = vadd.f32 %v172_v63, %v152_v29  ;;  %v175_v9 = vadd.f32 %v167_v3, %v147_v36  ;;  %v176_v33 = vadd.f32 %v168_v48, %v148_v37 }
  0xb0   :  { %v193_v34 = vmul.f32 %v189_v38, %v903_v49  ;;  %v194_v8 = vmul.f32 %v190_v0, %v903_v49  ;;  %v197_v23 = vmul.f32 %v189_v38, %v888_v26  ;;  %v198_v60 = vmul.f32 %v190_v0, %v888_v26 }
  0xb1   :  { %v199_v35 = vmul.f32 %v191_v30, %v888_v26  ;;  %v200_v22 = vmul.f32 %v192_v28, %v888_v26  ;;  %v195_v19 = vmul.f32 %v191_v30, %v903_v49  ;;  %v196_v20 = vmul.f32 %v192_v28, %v903_v49 }
  0xb2   :  { %v201_v48 = vadd.f32 %v193_v34, %v173_v21  ;;  %v202_v50 = vadd.f32 %v194_v8, %v174_v47  ;;  %v205_v15 = vadd.f32 %v197_v23, %v177_v13  ;;  %v206_v16 = vadd.f32 %v198_v60, %v178_v12 }
  0xb3   :  { %v207_v17 = vadd.f32 %v199_v35, %v179_v11  ;;  %v208_v18 = vadd.f32 %v200_v22, %v180_v32  ;;  %v1267_v29 = vperm.slane %v911_v4, 7  ;;  %v1268_v26 = vperm.slane %v913_v5, 7 }
  0xb4   :  { %v203_v37 = vadd.f32 %v195_v19, %v175_v9  ;;  %v204_v38 = vadd.f32 %v196_v20, %v176_v33  ;;  %v233_v49 = vadd.f32 %v968_v56, %v205_v15  ;;  %v234_v28 = vadd.f32 %v971_v57, %v206_v16 }
  0xb5   :  { %v1044_v25 = vmul.f32 %v1267_v29, %v1001_v10  ;;  %v1049_v36 = vmul.f32 %v1268_v26, %v1001_v10  ;;  %v235_v47 = vadd.f32 %v984_v61, %v207_v17  ;;  %v236_v21 = vadd.f32 %v987_v62, %v208_v18 }
  0xb6   :  { %v245_v60 = vperm.slane %v911_v4, 4  ;;  %v246_v8 = vperm.slane %v913_v5, 4  ;;  %v247_v32 = vperm.slane %v915_v6, 4  ;;  %v248_v11 = vperm.slane %v917_v7, 4  ;;  %v1087_v23 = vpop.permute.xlu2 %407 }
  0xb7   :  { %v1269_v9 = vperm.slane %v915_v6, 7  ;;  %v1270_v57 = vperm.slane %v917_v7, 7  ;;  %v229_v62 = vadd.f32 %v959_v51, %v201_v48  ;;  %v230_v13 = vadd.f32 %v961_v52, %v202_v50  ;;  %v299_v48 = vpop.permute.xlu0 %298 }
  0xb8   :  { %v1059_v12 = vpop.permute.xlu1 %322  ;;  %v231_v0 = vadd.f32 %v963_v53, %v203_v37  ;;  %v232_v1 = vadd.f32 %v965_v54, %v204_v38  ;;  %v1271_v30 = vmax.f32 %v928_v39, 0.0  ;;  %v1272_v3 = vmax.f32 %v931_v40, 0.0 }
  0xb9   :  { %v1064_v56 = vmul.f32 %v1269_v9, %v1001_v10  ;;  %v1069_v61 = vmul.f32 %v1270_v57, %v1001_v10  ;;  %v253_v34 = vmul.f32 %v245_v60, %v973_v58  ;;  %v254_v10 = vmul.f32 %v246_v8, %v973_v58 }
  0xba   :  { %v1077_v63 = vperm.slane %v1271_v30, 0  ;;  %v1081_v33 = vperm.slane %v1272_v3, 0  ;;  %v255_v51 = vmul.f32 %v247_v32, %v973_v58  ;;  %v256_v52 = vmul.f32 %v248_v11, %v973_v58 }
  0xbb   :  { %v249_v53 = vmul.f32 %v245_v60, %v890_v27  ;;  %v250_v39 = vmul.f32 %v246_v8, %v890_v27  ;;  %v251_v54 = vmul.f32 %v247_v32, %v890_v27  ;;  %v252_v40 = vmul.f32 %v248_v11, %v890_v27 }
  0xbc   :  { %v261_v35 = vadd.f32 %v253_v34, %v233_v49  ;;  %v262_v22 = vadd.f32 %v254_v10, %v234_v28  ;;  %v263_v19 = vadd.f32 %v255_v51, %v235_v47  ;;  %v264_v20 = vadd.f32 %v256_v52, %v236_v21 }
  0xbd   :  { %v257_v50 = vadd.f32 %v249_v53, %v229_v62  ;;  %v258_v15 = vadd.f32 %v250_v39, %v230_v13  ;;  %v259_v16 = vadd.f32 %v251_v54, %v231_v0  ;;  %v1273_v58 = vmax.f32 %v934_v41, 0.0 }
  0xbe   :  { %v260_v18 = vadd.f32 %v252_v40, %v232_v1  ;;  %v273_v29 = vperm.slane %v911_v4, 5  ;;  %v274_v26 = vperm.slane %v913_v5, 5  ;;  %v275_v37 = vperm.slane %v915_v6, 5 }
  0xbf   :  { %v1095_v17 = vperm.slane %v1273_v58, 0  ;;  %v276_v27 = vperm.slane %v917_v7, 5  ;;  %v1274_v38 = vperm.slane %v911_v4, 6  ;;  %v1275_v28 = vperm.slane %v913_v5, 6 }
  0xc0   :  { %v1276_v21 = vperm.slane %v915_v6, 6  ;;  %v277_v60 = vmul.f32 %v273_v29, %v905_v55  ;;  %v278_v8 = vmul.f32 %v274_v26, %v905_v55  ;;  %v279_v32 = vmul.f32 %v275_v37, %v905_v55 }
  0xc1   :  { %v309_v49 = vmul.f32 %v1274_v38, %v299_v48  ;;  %v310_v47 = vmul.f32 %v1275_v28, %v299_v48  ;;  %v281_v11 = vmul.f32 %v273_v29, %v1025_v2  ;;  %v351_v9 = vpop.permute.xlu1 %350  ;;  %v280_v57 = vmul.f32 %v276_v27, %v905_v55 }
  0xc2   :  { %v311_v41 = vmul.f32 %v1276_v21, %v299_v48  ;;  %v282_v62 = vmul.f32 %v274_v26, %v1025_v2  ;;  %v283_v13 = vmul.f32 %v275_v37, %v1025_v2  ;;  %v284_v0 = vmul.f32 %v276_v27, %v1025_v2  ;;  %v445_v26 = vpop.permute.xlu2 %444 }
  0xc3   :  { %v289_v1 = vadd.f32 %v281_v11, %v261_v35  ;;  %v1277_v30 = vperm.slane %v917_v7, 6  ;;  %v285_v34 = vadd.f32 %v277_v60, %v257_v50  ;;  %v286_v10 = vadd.f32 %v278_v8, %v258_v15  ;;  %v1284_v8 = vld [vmem:[#allocation7_spill] sm:$0xff] }
  0xc4   :  { %v290_v51 = vadd.f32 %v282_v62, %v262_v22  ;;  %v291_v52 = vadd.f32 %v283_v13, %v263_v19  ;;  %v292_v53 = vadd.f32 %v284_v0, %v264_v20  ;;  %v287_v39 = vadd.f32 %v279_v32, %v259_v16 }
  0xc5   :  { %v312_v3 = vmul.f32 %v1277_v30, %v299_v48  ;;  %v1278_v54 = vmax.f32 %v937_v42, 0.0  ;;  %v317_v55 = vadd.f32 %v309_v49, %v289_v1  ;;  %v288_v58 = vadd.f32 %v280_v57, %v260_v18 }
  0xc6   :  { %v313_v29 = vadd.f32 %v941_v43, %v285_v34  ;;  %v318_v37 = vadd.f32 %v310_v47, %v290_v51  ;;  %v319_v2 = vadd.f32 %v311_v41, %v291_v52  ;;  %v314_v27 = vadd.f32 %v945_v44, %v286_v10 }
  0xc7   :  { %v360_v40 = vperm.slane %v1278_v54, 0  ;;  %v320_v35 = vadd.f32 %v312_v3, %v292_v53  ;;  %v345_v48 = vadd.f32 %v1044_v25, %v317_v55  ;;  %v315_v22 = vadd.f32 %v949_v45, %v287_v39 }
  0xc8   :  { %v1279_v19 = vperm.slane %v911_v4, 7  ;;  %v1280_v42 = vperm.slane %v913_v5, 7  ;;  %v346_v43 = vadd.f32 %v1049_v36, %v318_v37  ;;  %v347_v15 = vadd.f32 %v1064_v56, %v319_v2 }
  0xc9   :  { %v348_v16 = vadd.f32 %v1069_v61, %v320_v35  ;;  %v1281_v44 = vperm.slane %v915_v6, 7  ;;  %v316_v45 = vadd.f32 %v953_v46, %v288_v58  ;;  %v1282_v4 = vperm.slane %v917_v7, 7  ;;  %v1283_v46 = vld [vmem:[#allocation6_spill] sm:$0xff]  ;;  %v570_v35 = vpop.permute.xlu0 %569 }
  0xca   :  { %v333_v20 = vmul.f32 %v1279_v19, %v1059_v12  ;;  %v334_v50 = vmul.f32 %v1280_v42, %v1059_v12  ;;  %v361_v28 = vmul.f32 %v1077_v63, %v351_v9  ;;  %v362_v36 = vmul.f32 %v1081_v33, %v351_v9  ;;  %v383_v61 = vpop.permute.xlu1 %382  ;;  %v495_v10 = vpop.permute.xlu2 %494 }
  0xcb   :  { %v335_v25 = vmul.f32 %v1281_v44, %v1059_v12  ;;  %v336_v18 = vmul.f32 %v1282_v4, %v1059_v12  ;;  %v363_v56 = vmul.f32 %v1095_v17, %v351_v9  ;;  %v364_v21 = vmul.f32 %v360_v40, %v351_v9  ;;  %v1285_v9 = vld [vmem:[#allocation8_spill] sm:$0xff] }
  0xcc   :  { %v341_v38 = vadd.f32 %v333_v20, %v313_v29  ;;  %v342_v49 = vadd.f32 %v334_v50, %v314_v27  ;;  %v389_v6 = vmul.f32 %v977_v59, %v899_v31  ;;  %v390_v41 = vmul.f32 %v1283_v46, %v899_v31 }
  0xcd   :  { %v343_v5 = vadd.f32 %v335_v25, %v315_v22  ;;  %v344_v47 = vadd.f32 %v336_v18, %v316_v45  ;;  %v391_v32 = vmul.f32 %v1284_v8, %v899_v31  ;;  %v365_v11 = vmul.f32 %v1077_v63, %v1035_v14 }
  0xce   :  { %v369_v7 = vadd.f32 %v361_v28, %v341_v38  ;;  %v370_v12 = vadd.f32 %v362_v36, %v342_v49  ;;  %v366_v57 = vmul.f32 %v1081_v33, %v1035_v14  ;;  %v392_v13 = vmul.f32 %v1285_v9, %v899_v31 }
  0xcf   :  { %v371_v60 = vadd.f32 %v363_v56, %v343_v5  ;;  %v372_v62 = vadd.f32 %v364_v21, %v344_v47  ;;  %v367_v0 = vmul.f32 %v1095_v17, %v1035_v14  ;;  %v393_v51 = vmul.f32 %v977_v59, %v383_v61 }
  0xd0   :  { %v397_v1 = vadd.f32 %v389_v6, %v369_v7  ;;  %v398_v30 = vadd.f32 %v390_v41, %v370_v12  ;;  %v394_v52 = vmul.f32 %v1283_v46, %v383_v61  ;;  %v395_v63 = vmul.f32 %v1284_v8, %v383_v61 }
  0xd1   :  { %v399_v3 = vadd.f32 %v391_v32, %v371_v60  ;;  %v400_v34 = vadd.f32 %v392_v13, %v372_v62  ;;  %v368_v33 = vmul.f32 %v360_v40, %v1035_v14  ;;  %v373_v53 = vadd.f32 %v365_v11, %v345_v48 }
  0xd2   :  { %v374_v39 = vadd.f32 %v366_v57, %v346_v43  ;;  %v375_v54 = vadd.f32 %v367_v0, %v347_v15  ;;  %v415_v59 = vadd.f32 %v1087_v23, %v397_v1  ;;  %v416_v37 = vadd.f32 %v1087_v23, %v398_v30  ;;  %v545_v20 = vpop.permute.xlu2 %544 }
  0xd3   :  { %v376_v31 = vadd.f32 %v368_v33, %v348_v16  ;;  %v1160_v55 = vpop.permute.xlu1 %412  ;;  %v1162_v17 = vadd.f32 %v393_v51, %v373_v53  ;;  %v396_v2 = vmul.f32 %v1285_v9, %v383_v61  ;;  %v417_v14 = vadd.f32 %v1087_v23, %v399_v3 }
  0xd4   :  { %v1164_v58 = vadd.f32 %v394_v52, %v374_v39  ;;  %v1166_v29 = vadd.f32 %v395_v63, %v375_v54  ;;  %v418_v40 = vadd.f32 %v1087_v23, %v400_v34  ;;  %v447_v27 = vperm.slane %v445_v26, 0 }
  0xd5   :  { %v1173_v48 = vmax.f32 %v415_v59, 0.0  ;;  %v1175_v22 = vmax.f32 %v416_v37, 0.0  ;;  %v497_v19 = vperm.slane %v495_v10, 0  ;;  %v1177_v42 = vadd.f32 %v396_v2, %v376_v31 }
  0xd6   :  { %v1179_v50 = vmax.f32 %v417_v14, 0.0  ;;  %v1181_v43 = vmax.f32 %v418_v40, 0.0  ;;  %v572_v15 = vperm.slane %v570_v35, 0  ;;  %v438_v16 = vperm.slane %v1037_v24, 0 }
  0xd7   :  { %v547_v44 = vperm.slane %v545_v20, 0  ;;  %v498_v23 = vmul.f32 %v497_v19, %v1173_v48  ;;  %v499_v26 = vmul.f32 %v497_v19, %v1175_v22  ;;  %v448_v45 = vmul.f32 %v447_v27, %v1173_v48 }
  0xd8   :  { %v449_v4 = vmul.f32 %v447_v27, %v1175_v22  ;;  %v500_v18 = vmul.f32 %v497_v19, %v1179_v50  ;;  %v501_v38 = vmul.f32 %v497_v19, %v1181_v43  ;;  %v1191_v49 = vmul.f32 %v572_v15, %v1173_v48 }
  0xd9   :  { %v450_v5 = vmul.f32 %v447_v27, %v1179_v50  ;;  %v1195_v24 = vmul.f32 %v572_v15, %v1175_v22  ;;  %v451_v28 = vmul.f32 %v447_v27, %v1181_v43  ;;  %v456_v36 = vrot.slane %v448_v45, 1 }
  0xda   :  { %v457_v56 = vrot.slane %v449_v4, 1  ;;  %v1199_v61 = vmul.f32 %v572_v15, %v1179_v50  ;;  %v1202_v47 = vmul.f32 %v572_v15, %v1181_v43  ;;  %v506_v46 = vrot.slane %v498_v23, 3 }
  0xdb   :  { %v458_v21 = vrot.slane %v450_v5, 1  ;;  %v439_v41 = vmul.f32 %v438_v16, %v1173_v48  ;;  %v440_v7 = vmul.f32 %v438_v16, %v1175_v22  ;;  %v459_v12 = vrot.slane %v451_v28, 1 }
  0xdc   :  { %v470_v25 = vpop.permute.xlu1 %469  ;;  %v441_v60 = vmul.f32 %v438_v16, %v1179_v50  ;;  %v442_v57 = vmul.f32 %v438_v16, %v1181_v43  ;;  %v507_v34 = vrot.slane %v499_v26, 3  ;;  %v508_v10 = vrot.slane %v500_v18, 3 }
  0xdd   :  { %v472_v6 = vperm.slane %v470_v25, 0  ;;  %v464_v62 = vadd.f32 %v456_v36, %v439_v41  ;;  %v465_v9 = vadd.f32 %v457_v56, %v440_v7  ;;  %v509_v31 = vrot.slane %v501_v38, 3 }
  0xde   :  { %v466_v0 = vadd.f32 %v458_v21, %v441_v60  ;;  %v467_v51 = vadd.f32 %v459_v12, %v442_v57  ;;  %v548_v59 = vmul.f32 %v547_v44, %v1173_v48  ;;  %v549_v37 = vmul.f32 %v547_v44, %v1175_v22  ;;  %v620_v60 = vpop.permute.xlu2 %619 }
  0xdf   :  { %v473_v8 = vmul.f32 %v472_v6, %v1173_v48  ;;  %v474_v32 = vmul.f32 %v472_v6, %v1175_v22  ;;  %v475_v11 = vmul.f32 %v472_v6, %v1179_v50  ;;  %v476_v13 = vmul.f32 %v472_v6, %v1181_v43 }
  0xe0   :  { %v550_v14 = vmul.f32 %v547_v44, %v1179_v50  ;;  %v551_v40 = vmul.f32 %v547_v44, %v1181_v43  ;;  %v1218_v35 = vadd.f32 %v1160_v55, %v1162_v17  ;;  %v1223_v19 = vadd.f32 %v1160_v55, %v1164_v58 }
  0xe1   :  { %v481_v1 = vrot.slane %v473_v8, 2  ;;  %v482_v30 = vrot.slane %v474_v32, 2  ;;  %v483_v3 = vrot.slane %v475_v11, 2  ;;  %v484_v52 = vrot.slane %v476_v13, 2 }
  0xe2   :  { %v556_v38 = vrot.slane %v548_v59, 5  ;;  %v557_v5 = vrot.slane %v549_v37, 5  ;;  %v421_v58 = vadd.f32 %v1160_v55, %v1166_v29  ;;  %v558_v36 = vrot.slane %v550_v14, 5 }
  0xe3   :  { %v489_v33 = vadd.f32 %v481_v1, %v464_v62  ;;  %v490_v53 = vadd.f32 %v482_v30, %v465_v9  ;;  %v491_v39 = vadd.f32 %v483_v3, %v466_v0  ;;  %v492_v2 = vadd.f32 %v484_v52, %v467_v51 }
  0xe4   :  { %v581_v41 = vrot.slane %v1191_v49, 6  ;;  %v559_v7 = vrot.slane %v551_v40, 5  ;;  %v422_v12 = vadd.f32 %v1160_v55, %v1177_v42  ;;  %v583_v29 = vrot.slane %v1199_v61, 6 }
  0xe5   :  { %v520_v63 = vpop.permute.xlu1 %519  ;;  %v514_v25 = vadd.f32 %v506_v46, %v489_v33  ;;  %v515_v23 = vadd.f32 %v507_v34, %v490_v53  ;;  %v516_v26 = vadd.f32 %v508_v10, %v491_v39  ;;  %v517_v45 = vadd.f32 %v509_v31, %v492_v2 }
  0xe6   :  { %v522_v54 = vperm.slane %v520_v63, 0  ;;  %v582_v46 = vrot.slane %v1195_v24, 6  ;;  %v584_v9 = vrot.slane %v1202_v47, 6  ;;  %v427_v13 = vmax.f32 %v1218_v35, 0.0 }
  0xe7   :  { %v428_v49 = vmax.f32 %v1223_v19, 0.0  ;;  %v429_v24 = vmax.f32 %v421_v58, 0.0  ;;  %v622_v1 = vperm.slane %v620_v60, 0  ;;  %v430_v55 = vmax.f32 %v422_v12, 0.0 }
  0xe8   :  { %v523_v27 = vmul.f32 %v522_v54, %v1173_v48  ;;  %v524_v20 = vmul.f32 %v522_v54, %v1175_v22  ;;  %v525_v15 = vmul.f32 %v522_v54, %v1179_v50  ;;  %v526_v16 = vmul.f32 %v522_v54, %v1181_v43 }
  0xe9   :  { %v623_v39 = vmul.f32 %v622_v1, %v427_v13  ;;  %v624_v54 = vmul.f32 %v622_v1, %v428_v49  ;;  %v625_v31 = vmul.f32 %v622_v1, %v429_v24  ;;  %v680_v58 = vlaneseq }
  0xea   :  { %v531_v44 = vrot.slane %v523_v27, 4  ;;  %v532_v4 = vrot.slane %v524_v20, 4  ;;  %v533_v17 = vrot.slane %v525_v15, 4  ;;  %v534_v18 = vrot.slane %v526_v16, 4 }
  0xeb   :  { %vm682_vm3 = vcmp.lt.s32.totalorder %v680_v58, 512 }
  0xec   :  { %v539_v28 = vadd.f32 %v531_v44, %v514_v25  ;;  %v540_v56 = vadd.f32 %v532_v4, %v515_v23  ;;  %v541_v21 = vadd.f32 %v533_v17, %v516_v26  ;;  %v542_v6 = vadd.f32 %v534_v18, %v517_v45 }
  0xee   :  { %v595_v8 = vpop.permute.xlu1 %594  ;;  %v564_v32 = vadd.f32 %v556_v38, %v539_v28  ;;  %v565_v11 = vadd.f32 %v557_v5, %v540_v56  ;;  %v566_v57 = vadd.f32 %v558_v36, %v541_v21  ;;  %v567_v0 = vadd.f32 %v559_v7, %v542_v6 }
  0xef   :  { %v597_v62 = vperm.slane %v595_v8, 0 }
  0xf0   :  { %v589_v10 = vadd.f32 %v581_v41, %v564_v32  ;;  %v590_v61 = vadd.f32 %v582_v46, %v565_v11  ;;  %v591_v51 = vadd.f32 %v583_v29, %v566_v57  ;;  %v592_v52 = vadd.f32 %v584_v9, %v567_v0 }
  0xf1   :  { %v598_v30 = vmul.f32 %v597_v62, %v1173_v48  ;;  %v599_v42 = vmul.f32 %v597_v62, %v1175_v22  ;;  %v600_v3 = vmul.f32 %v597_v62, %v1179_v50  ;;  %v601_v34 = vmul.f32 %v597_v62, %v1181_v43  ;;  %v659_v43 = vpop.permute.xlu2 %658 }
  0xf2   :  { %v626_v48 = vmul.f32 %v622_v1, %v430_v55  ;;  %v661_v23 = vperm.slane %v659_v43, 0 }
  0xf3   :  { %v606_v47 = vrot.slane %v598_v30, 7  ;;  %v607_v63 = vrot.slane %v599_v42, 7  ;;  %v608_v33 = vrot.slane %v600_v3, 7  ;;  %v609_v53 = vrot.slane %v601_v34, 7 }
  0xf5   :  { %v614_v59 = vadd.f32 %v606_v47, %v589_v10  ;;  %v615_v37 = vadd.f32 %v607_v63, %v590_v61  ;;  %v616_v2 = vadd.f32 %v608_v33, %v591_v51  ;;  %v617_v22 = vadd.f32 %v609_v53, %v592_v52 }
  0xf7   :  { %v633_v14 = vpop.permute.xlu1 %632  ;;  %v627_v50 = vadd.f32 %v623_v39, %v614_v59  ;;  %v628_v35 = vadd.f32 %v624_v54, %v615_v37  ;;  %v629_v27 = vadd.f32 %v625_v31, %v616_v2  ;;  %v630_v19 = vadd.f32 %v626_v48, %v617_v22 }
  0xf8   :  { %v635_v40 = vperm.slane %v633_v14, 0 }
  0xfa   :  { %v636_v20 = vmul.f32 %v635_v40, %v427_v13  ;;  %v637_v15 = vmul.f32 %v635_v40, %v428_v49  ;;  %v638_v16 = vmul.f32 %v635_v40, %v429_v24  ;;  %v639_v25 = vmul.f32 %v635_v40, %v430_v55 }
  0xfc   :  { %v644_v26 = vrot.slane %v636_v20, 1  ;;  %v645_v44 = vrot.slane %v637_v15, 1  ;;  %v646_v45 = vrot.slane %v638_v16, 1  ;;  %v647_v4 = vrot.slane %v639_v25, 1 }
  0xfe   :  { %v652_v17 = vadd.f32 %v644_v26, %v627_v50  ;;  %v653_v18 = vadd.f32 %v645_v44, %v628_v35  ;;  %v654_v38 = vadd.f32 %v646_v45, %v629_v27  ;;  %v655_v5 = vadd.f32 %v647_v4, %v630_v19 }
 0x100   :  { %v663_v28 = vadd.f32 %v661_v23, %v653_v18  ;;  %v664_v36 = vadd.f32 %v661_v23, %v654_v38  ;;  %v665_v56 = vadd.f32 %v661_v23, %v655_v5  ;;  %v662_v21 = vadd.f32 %v661_v23, %v652_v17 }
 0x102   :  { %v670_v6 = vrot.slane %v663_v28, 7  ;;  %v671_v41 = vrot.slane %v664_v36, 6  ;;  %v672_v46 = vrot.slane %v665_v56, 5 }
 0x104   :  { %v674_v7 = vsel %vm673_vm0, %v662_v21, %v670_v6  ;;  %v676_v12 = vsel %vm675_vm1, %v671_v41, %v672_v46 }
 0x105   :  { %v678_v60 = vsel %vm677_vm2, %v674_v7, %v676_v12 }
 0x106   :  { %684 = vst.msk [vmem:[#allocation3] sm:$0xf] %vm682_vm3, %v678_v60 }
 0x107   :  { %695 = dma.vmem_to_hbm [thread:$0]  %s691_s17, 64, %s693_s20, [#allocation4]  }
 0x108   :  { %770 = dma.done.wait [#allocation4], 64  }
 0x109   :  { %771 = vsyncadd [#allocation4], 4294967232 }
 0x10a   :  { %700 = vsyncpa [#allocation4], 1 }

</bundles_post_ra>
